<compile_context>
chip_gen: v6e
topology: v6e:2x2x1
jax: 0.10.0
libtpu: 0.0.40
codegen_flags: <defaults>
</compile_context>

<pallas_src>
import functools
import math

import jax
import jax.numpy as jnp
from jax.experimental import pallas as pl
from jax.experimental.pallas import tpu as pltpu


# ----------------------------------------------------------------------------
# Parameter construction (glue, plain JAX): OrthonormalTransform matrix from
# Givens-rotation angles and sign vector `mus`.
# ----------------------------------------------------------------------------
def orthonormal_matrix(angles, mus, n):
    """Build the n x n orthonormal matrix from n*(n-1)/2 Givens angles."""
    R = jnp.eye(n, dtype=jnp.float32)
    iAng = 0
    for top in range(n - 1):
        for btm in range(top + 1, n):
            a = angles[iAng]
            c, s = jnp.cos(a), jnp.sin(a)
            G = jnp.eye(n, dtype=jnp.float32)
            G = G.at[top, top].set(c)
            G = G.at[top, btm].set(-s)
            G = G.at[btm, top].set(s)
            G = G.at[btm, btm].set(c)
            R = G @ R
            iAng += 1
    return mus[:, None].astype(jnp.float32) * R


# ----------------------------------------------------------------------------
# Pallas kernel: lane-dense rows @ W_big
# ----------------------------------------------------------------------------
def _rotation_kernel(x_ref, w_ref, o_ref):
    o_ref[...] = jnp.dot(
        x_ref[...], w_ref[...], preferred_element_type=jnp.float32
    ).astype(o_ref.dtype)


@functools.partial(jax.jit, static_argnames=("tm",))
def _apply_rotation_lanes(x_g, w_big, *, tm):
    """x_g: (n_g, width) f32, w_big: (width, width) f32 -> (n_g, width) f32."""
    n_g, width = x_g.shape
    # Biggest tile that still makes sense; full-extent block if the array is
    # smaller than the requested tile (also satisfies the (8,128) rule).
    tm_eff = n_g if n_g <= tm else tm
    grid = (pl.cdiv(n_g, tm_eff),)
    return pl.pallas_call(
        _rotation_kernel,
        out_shape=jax.ShapeDtypeStruct((n_g, width), x_g.dtype),
        grid_spec=pltpu.PrefetchScalarGridSpec(
            num_scalar_prefetch=0,
            grid=grid,
            in_specs=[
                pl.BlockSpec((tm_eff, width), lambda i: (i, 0)),
                # Constant index map -> weight DMA'd once, VMEM-resident.
                pl.BlockSpec((width, width), lambda i: (0, 0)),
            ],
            out_specs=pl.BlockSpec((tm_eff, width), lambda i: (i, 0)),
        ),
        compiler_params=pltpu.CompilerParams(
            dimension_semantics=("parallel",),
        ),
    )(x_g, w_big)


# ----------------------------------------------------------------------------
# Module wrapper
# ----------------------------------------------------------------------------
class NsoltIntermediateRotation2dLayer:
    def __init__(self, number_of_channels, mode="Synthesis", name="",
                 row_tile=2048):
        self.name = name
        self.number_of_channels = list(number_of_channels)
        self.mode = mode
        self.row_tile = int(row_tile)
        ps, pa = self.number_of_channels
        self.description = (
            mode + " NSOLT intermediate rotation (ps,pa) = ("
            + str(ps) + "," + str(pa) + ")"
        )
        # Deterministic init matching the PyTorch module: angles = zeros,
        # mus = ones (OrthonormalTransform defaults) -> identity rotation.
        n_angles = pa * (pa - 1) // 2
        self.angles = jnp.zeros((n_angles,), dtype=jnp.float32)
        self.mus = jnp.ones((pa,), dtype=jnp.float32)
        n_chs = ps + pa
        # Fold k pixels into the lane axis so the lane width is a multiple
        # of 128 (k*C = lcm(C, 128)).
        self._k = 128 // math.gcd(n_chs, 128)
        self._rebuild_weight()

    def set_angles_mus(self, angles=None, mus=None):
        if angles is not None:
            self.angles = jnp.asarray(angles, dtype=jnp.float32)
        if mus is not None:
            self.mus = jnp.asarray(mus, dtype=jnp.float32)
        self._rebuild_weight()

    def _rebuild_weight(self):
        ps, pa = self.number_of_channels
        R = orthonormal_matrix(self.angles, self.mus, pa)
        # Column-vector view: Synthesis applies R^T, Analysis applies R.
        # Row view (kernel):  W_pa = R (Synthesis),  R^T (Analysis).
        w_pa = R if self.mode == "Synthesis" else R.T
        w_full = jnp.zeros((ps + pa, ps + pa), dtype=jnp.float32)
        w_full = w_full.at[:ps, :ps].set(jnp.eye(ps, dtype=jnp.float32))
        w_full = w_full.at[ps:, ps:].set(w_pa)
        # Lane-dense weight: block-diagonal replication over k folded pixels.
        self._w_big = jnp.kron(
            jnp.eye(self._k, dtype=jnp.float32), w_full
        )

    def __call__(self, x):
        # x: (nSamples, nRows, nCols, nChs), float32
        n_samples, n_rows, n_cols, n_chs = x.shape
        ps, pa = self.number_of_channels
        assert n_chs == ps + pa
        k = self._k
        n_pix = n_samples * n_rows * n_cols
        x_rows = x.reshape(n_pix, n_chs)
        if n_pix % k == 0:
            # Free row-major reshape: fold k pixels into the lane axis.
            x_g = x_rows.reshape(n_pix // k, k * n_chs)
            z_g = _apply_rotation_lanes(x_g, self._w_big, tm=self.row_tile)
            z_rows = z_g.reshape(n_pix, n_chs)
        else:
            # Rare fallback: small pad to kron granularity only.
            # TODO(synk): avoid the pad copy with a scalar-prefetched ragged
            # epilogue if this path ever matters for real workloads.
            pad = k - (n_pix % k)
            x_g = jnp.pad(x_rows, ((0, pad), (0, 0))).reshape(-1, k * n_chs)
            z_g = _apply_rotation_lanes(x_g, self._w_big, tm=self.row_tile)
            z_rows = z_g.reshape(-1, n_chs)[:n_pix]
        return z_rows.reshape(n_samples, n_rows, n_cols, n_chs)


# Pure-JAX reference (mirrors the PyTorch forward) for correctness checks.
def reference_forward(x, ps, pa, mode, angles, mus):
    R = orthonormal_matrix(angles, mus, pa)
    Ya = x[..., ps:].reshape(-1, pa).T            # (pa, N)
    Za = (R.T @ Ya) if mode == "Synthesis" else (R @ Ya)
    z = x.at[..., ps:].set(
        Za.T.reshape(x.shape[0], x.shape[1], x.shape[2], pa)
    )
    return z


if __name__ == "__main__":
    key = jax.random.PRNGKey(0)
    kx, ka, km, kx2 = jax.random.split(key, 4)

    ps, pa = 4, 4
    n_samples, n_rows, n_cols = 2, 16, 16
    x = jax.random.normal(
        kx, (n_samples, n_rows, n_cols, ps + pa), dtype=jnp.float32
    )

    # 1) Module-default init (angles=0, mus=1): rotation is identity, Z == X.
    layer = NsoltIntermediateRotation2dLayer([ps, pa], mode="Synthesis")
    z = jax.block_until_ready(layer(x))
    assert z.shape == x.shape
    z_ref0 = reference_forward(x, ps, pa, "Synthesis", layer.angles, layer.mus)
    assert jnp.allclose(z, z_ref0, atol=1e-5), "mismatch vs reference (identity)"
    assert jnp.allclose(z, x, atol=1e-6), "identity rotation should return X"

    # 2) Nontrivial angles / mus: validate the kernel path (including the
    #    Synthesis/Analysis transpose convention) against the reference.
    n_angles = pa * (pa - 1) // 2
    angles = jax.random.normal(ka, (n_angles,), dtype=jnp.float32)
    mus = jnp.where(
        jax.random.bernoulli(km, 0.5, (pa,)), 1.0, -1.0
    ).astype(jnp.float32)
    for mode in ("Synthesis", "Analysis"):
        layer2 = NsoltIntermediateRotation2dLayer([ps, pa], mode=mode)
        layer2.set_angles_mus(angles, mus)
        z2 = jax.block_until_ready(layer2(x))
        z2_ref = reference_forward(x, ps, pa, mode, angles, mus)
        assert jnp.allclose(z2, z2_ref, atol=1e-5), (
            "mismatch vs reference (" + mode + ")"
        )

    # 3) Ragged-tail path: a grid whose last block is partially out of bounds
    #    (masked writes), exercised with a small row tile.
    x3 = jax.random.normal(kx2, (3, 10, 16, ps + pa), dtype=jnp.float32)
    layer3 = NsoltIntermediateRotation2dLayer(
        [ps, pa], mode="Synthesis", row_tile=8
    )
    layer3.set_angles_mus(angles, mus)
    z3 = jax.block_until_ready(layer3(x3))
    z3_ref = reference_forward(x3, ps, pa, "Synthesis", angles, mus)
    assert jnp.allclose(z3, z3_ref, atol=1e-5), "mismatch vs reference (ragged)"

    print("KERNEL_OK")
</pallas_src>

<mosaic_0001>
module attributes {stable_mosaic.version = 11 : i64} {
  func.func @_rotation_kernel(%arg0: i32, %arg1: memref<32x128xf32, #tpu.memory_space<vmem>>, %arg2: memref<128x128xf32, #tpu.memory_space<vmem>>, %arg3: memref<32x128xf32, #tpu.memory_space<vmem>>) attributes {dimension_semantics = [#tpu.dimension_semantics<parallel>], iteration_bounds = array<i64: 1>, scalar_prefetch = 0 : i64, scratch_operands = 0 : i64, tpu.core_type = #tpu.core_type<tc>, window_params = [{transform_indices = @transform_0, window_bounds = array<i64: 32, 128>}, {pipeline_mode = #tpu.pipeline_mode<synchronous>, transform_indices = @transform_1, window_bounds = array<i64: 128, 128>}, {transform_indices = @transform_2, window_bounds = array<i64: 32, 128>}]} {
    %c0 = arith.constant 0 : index
    %c0_0 = arith.constant 0 : index
    %0 = vector.load %arg1[%c0, %c0_0] : memref<32x128xf32, #tpu.memory_space<vmem>>, vector<32x128xf32>
    %c0_1 = arith.constant 0 : index
    %c0_2 = arith.constant 0 : index
    %1 = vector.load %arg2[%c0_1, %c0_2] : memref<128x128xf32, #tpu.memory_space<vmem>>, vector<128x128xf32>
    %cst = arith.constant dense<0.000000e+00> : vector<32x128xf32>
    %2 = tpu.matmul %0, %1, %cst {dimension_numbers = #tpu.dot_dimension_numbers<[1], [0], [0], [1], [0, 0, 1, 1], [], []>} : vector<32x128xf32>, vector<128x128xf32>, vector<32x128xf32> -> vector<32x128xf32>
    %c0_3 = arith.constant 0 : index
    %c0_4 = arith.constant 0 : index
    %3 = vector.load %arg3[%c0_3, %c0_4] : memref<32x128xf32, #tpu.memory_space<vmem>>, vector<32x128xf32>
    tpu.vector_store %arg3[%c0_3, %c0_4], %2 {strides = array<i32>} : memref<32x128xf32, #tpu.memory_space<vmem>>, vector<32x128xf32>,
    return
  }
  func.func @transform_0(%arg0: i32) -> (i32, i32) {
    %c0_i32 = arith.constant 0 : i32
    %c0_i32_0 = arith.constant 0 : i32
    return %arg0, %c0_i32 : i32, i32
  }
  func.func @transform_1(%arg0: i32) -> (i32, i32) {
    %c0_i32 = arith.constant 0 : i32
    %c0_i32_0 = arith.constant 0 : i32
    %c0_i32_1 = arith.constant 0 : i32
    return %c0_i32, %c0_i32_0 : i32, i32
  }
  func.func @transform_2(%arg0: i32) -> (i32, i32) {
    %c0_i32 = arith.constant 0 : i32
    %c0_i32_0 = arith.constant 0 : i32
    return %arg0, %c0_i32 : i32, i32
  }
}

</mosaic_0001>

<bundles_post_ra>
// kernel: _apply_rotation_lanes.1
= control target key start
LH: loop header
LB: loop body
LE: loop exit
PB: predicated region body
PF: predicated region fallthrough
CT: control target
= control target key end

     0   :  { %7 = vsyncpa [#allocation3], 0  ;;  %s366_s0 = inlined_call_operand.hbm [shape: f32[32,128], index: 0, kind: input, shape index: {}]   ;;  %s367_s1 = inlined_call_operand.hbm [shape: f32[128,128], index: 1, kind: input, shape index: {}]   ;;  %s368_s2 = inlined_call_operand.hbm [shape: f32[32,128], index: 2, kind: output, shape index: {}]  }
   0x1   :  { %8 = vsyncpa [#allocation6], 0 }
   0x2   :  { %9 = vsyncpa [#allocation4], 0  ;;  %s328_s9 = smov [#allocation2]  }
   0x3   :  { %s15_s10 = sshll.u32 %s328_s9, 4  ;;  %s16_s10 = int_to_ptr.vmem [resolvable:$true] %s15_s10 }
   0x4   :  { %s270_s11 = scalar_lea.vmem %s16_s10, 512  ;;  %p275_p1 = scmp.lt.s32.totalorder %s16_s10, %s16_s10 }
   0x5   :  { %p271_p0 = scmp.ne.s32.totalorder %s16_s10, %s270_s11  ;;  %p276_p2 = scmp.lt.s32.totalorder %s270_s11, %s270_s11 }
   0x7   :  { %p277_p3 = por %p276_p2, %p275_p1 }
   0x9   :  { %p278_p4 = pnand %p277_p3, %p271_p0 }
   0xb   :  { %281 = shalt.err (!%p278_p4)
}
   0xc   :  { %s329_s12 = smov 128   ;;  %s330_s13 = smov 8  }
   0xd   :  { %21 = dma.hbm_to_vmem [thread:$0]  %s366_s0, 512, %s16_s10, [#allocation3], %s329_s12, %s329_s12, %s330_s13  }
   0xe   :  { %s331_s16 = smov [#allocation5]  }
   0xf   :  { %s27_s17 = sshll.u32 %s331_s16, 4  ;;  %s28_s17 = int_to_ptr.vmem [resolvable:$true] %s27_s17 }
  0x10   :  { %s290_s18 = scalar_lea.vmem %s28_s17, 2048  ;;  %p295_p6 = scmp.lt.s32.totalorder %s28_s17, %s28_s17 }
  0x11   :  { %p291_p5 = scmp.ne.s32.totalorder %s28_s17, %s290_s18  ;;  %p296_p7 = scmp.lt.s32.totalorder %s290_s18, %s290_s18 }
  0x13   :  { %p297_p8 = por %p296_p7, %p295_p6 }
  0x15   :  { %p298_p9 = pnand %p297_p8, %p291_p5 }
  0x17   :  { %301 = shalt.err (!%p298_p9)
}
  0x18   :  { %33 = dma.hbm_to_vmem [thread:$0]  %s367_s1, 2048, %s28_s17, [#allocation6], %s329_s12, %s329_s12, %s330_s13  }
  0x19   :  { %322 = dma.done.wait [#allocation3], 512  }
  0x1a   :  { %323 = vsyncadd [#allocation3], 4294966784 }
  0x1b   :  { %324 = dma.done.wait [#allocation6], 2048  }
  0x1c   :  { %325 = vsyncadd [#allocation6], 4294965248  ;;  %v59_v0 = vld [vmem:[#allocation5 + $0x78] sm:$0xff]  ;;  %v58_v1 = vld [vmem:[#allocation5 + $0x70] sm:$0xff]  ;;  %s332_s0 = smov [#allocation7]  }
  0x1d   :  { %187 = vmatprep.subr.mxu0 %v59_v0  ;;  %225 = vmatprep.subr.mxu1 %v59_v0  ;;  %v57_v2 = vld [vmem:[#allocation5 + $0x68] sm:$0xff]  ;;  %v56_v3 = vld [vmem:[#allocation5 + $0x60] sm:$0xff]  ;;  %v55_v4 = vld [vmem:[#allocation5 + $0x58] sm:$0xff]  ;;  %s154_s1 = sshll.u32 %s332_s0, 4  ;;  %s155_s1 = int_to_ptr.vmem [resolvable:$true] %s154_s1 }
  0x1e   :  { %188 = vmatpush3.msra.mxu0 %v59_v0  ;;  %241 = vmatpush3.msra.mxu1 %v59_v0  ;;  %v54_v5 = vld [vmem:[#allocation5 + $0x50] sm:$0xff]  ;;  %v53_v6 = vld [vmem:[#allocation5 + $0x48] sm:$0xff]  ;;  %v52_v7 = vld [vmem:[#allocation5 + $0x40] sm:$0xff]  ;;  %s302_s21 = scalar_lea.vmem %s155_s1, 512  ;;  %p307_p11 = scmp.lt.s32.totalorder %s155_s1, %s155_s1 }
  0x1f   :  { %189 = vmatprep.subr.mxu0 %v58_v1  ;;  %226 = vmatprep.subr.mxu1 %v58_v1  ;;  %v51_v8 = vld [vmem:[#allocation5 + $0x38] sm:$0xff]  ;;  %v50_v9 = vld [vmem:[#allocation5 + $0x30] sm:$0xff]  ;;  %v49_v10 = vld [vmem:[#allocation5 + $0x28] sm:$0xff]  ;;  %p303_p10 = scmp.ne.s32.totalorder %s155_s1, %s302_s21  ;;  %p308_p12 = scmp.lt.s32.totalorder %s302_s21, %s302_s21 }
  0x20   :  { %190 = vmatpush3.msra.mxu0 %v58_v1  ;;  %242 = vmatpush3.msra.mxu1 %v58_v1  ;;  %v48_v11 = vld [vmem:[#allocation5 + $0x20] sm:$0xff]  ;;  %v47_v12 = vld [vmem:[#allocation5 + $0x18] sm:$0xff]  ;;  %v46_v13 = vld [vmem:[#allocation5 + $0x10] sm:$0xff] }
  0x21   :  { %191 = vmatprep.subr.mxu0 %v57_v2  ;;  %227 = vmatprep.subr.mxu1 %v57_v2  ;;  %v45_v14 = vld [vmem:[#allocation5 + $0x8] sm:$0xff]  ;;  %v44_v15 = vld [vmem:[#allocation5] sm:$0xff]  ;;  %v42_v17 = vld [vmem:[#allocation2 + $0x10] sm:$0xff]  ;;  %p309_p13 = por %p308_p12, %p307_p11 }
  0x22   :  { %192 = vmatpush3.msra.mxu0 %v57_v2  ;;  %243 = vmatpush3.msra.mxu1 %v57_v2  ;;  %v40_v16 = vld [vmem:[#allocation2] sm:$0xff]  ;;  %v41_v18 = vld [vmem:[#allocation2 + $0x8] sm:$0xff]  ;;  %v43_v19 = vld [vmem:[#allocation2 + $0x18] sm:$0xff] }
  0x23   :  { %193 = vmatprep.subr.mxu0 %v56_v3  ;;  %228 = vmatprep.subr.mxu1 %v56_v3  ;;  %p310_p0 = pnand %p309_p13, %p303_p10 }
  0x24   :  { %194 = vmatpush3.msra.mxu0 %v56_v3  ;;  %244 = vmatpush3.msra.mxu1 %v56_v3 }
  0x25   :  { %195 = vmatprep.subr.mxu0 %v55_v4  ;;  %229 = vmatprep.subr.mxu1 %v55_v4 }
  0x26   :  { %196 = vmatpush3.msra.mxu0 %v55_v4  ;;  %245 = vmatpush3.msra.mxu1 %v55_v4 }
  0x27   :  { %197 = vmatprep.subr.mxu0 %v54_v5  ;;  %230 = vmatprep.subr.mxu1 %v54_v5 }
  0x28   :  { %198 = vmatpush3.msra.mxu0 %v54_v5  ;;  %246 = vmatpush3.msra.mxu1 %v54_v5 }
  0x29   :  { %199 = vmatprep.subr.mxu0 %v53_v6  ;;  %231 = vmatprep.subr.mxu1 %v53_v6 }
  0x2a   :  { %200 = vmatpush3.msra.mxu0 %v53_v6  ;;  %247 = vmatpush3.msra.mxu1 %v53_v6 }
  0x2b   :  { %201 = vmatprep.subr.mxu0 %v52_v7  ;;  %232 = vmatprep.subr.mxu1 %v52_v7 }
  0x2c   :  { %202 = vmatpush3.msra.mxu0 %v52_v7  ;;  %248 = vmatpush3.msra.mxu1 %v52_v7 }
  0x2d   :  { %203 = vmatprep.subr.mxu0 %v51_v8  ;;  %233 = vmatprep.subr.mxu1 %v51_v8 }
  0x2e   :  { %204 = vmatpush3.msra.mxu0 %v51_v8  ;;  %249 = vmatpush3.msra.mxu1 %v51_v8 }
  0x2f   :  { %205 = vmatprep.subr.mxu0 %v50_v9  ;;  %234 = vmatprep.subr.mxu1 %v50_v9 }
  0x30   :  { %206 = vmatpush3.msra.mxu0 %v50_v9  ;;  %250 = vmatpush3.msra.mxu1 %v50_v9 }
  0x31   :  { %207 = vmatprep.subr.mxu0 %v49_v10  ;;  %235 = vmatprep.subr.mxu1 %v49_v10 }
  0x32   :  { %208 = vmatpush3.msra.mxu0 %v49_v10  ;;  %251 = vmatpush3.msra.mxu1 %v49_v10 }
  0x33   :  { %209 = vmatprep.subr.mxu0 %v48_v11  ;;  %236 = vmatprep.subr.mxu1 %v48_v11 }
  0x34   :  { %210 = vmatpush3.msra.mxu0 %v48_v11  ;;  %252 = vmatpush3.msra.mxu1 %v48_v11 }
  0x35   :  { %211 = vmatprep.subr.mxu0 %v47_v12  ;;  %237 = vmatprep.subr.mxu1 %v47_v12 }
  0x36   :  { %212 = vmatpush3.msra.mxu0 %v47_v12  ;;  %253 = vmatpush3.msra.mxu1 %v47_v12 }
  0x37   :  { %213 = vmatprep.subr.mxu0 %v46_v13  ;;  %238 = vmatprep.subr.mxu1 %v46_v13 }
  0x38   :  { %214 = vmatpush3.msra.mxu0 %v46_v13  ;;  %254 = vmatpush3.msra.mxu1 %v46_v13 }
  0x39   :  { %215 = vmatprep.subr.mxu0 %v45_v14  ;;  %239 = vmatprep.subr.mxu1 %v45_v14 }
  0x3a   :  { %216 = vmatpush3.msra.mxu0 %v45_v14  ;;  %255 = vmatpush3.msra.mxu1 %v45_v14 }
  0x3b   :  { %217 = vmatprep.subr.mxu0 %v44_v15  ;;  %240 = vmatprep.subr.mxu1 %v44_v15 }
  0x3c   :  { %218 = vmatpush3.msra.mxu0 %v44_v15  ;;  %256 = vmatpush3.msra.mxu1 %v44_v15 }
  0x3d   :  { %219 = vmatprep.mubr.f32.mxu0 %v40_v16  ;;  %222 = vmatprep.mubr.f32.mxu1 %v42_v17 }
  0x3e   :  { %220 = vmatmul.mubr.f32.vlgmr.msra.gmra.mxu0 %v41_v18  ;;  %223 = vmatmul.mubr.f32.vlgmr.msra.gmra.mxu1 %v43_v19 }
  0xfe   :  { %v221_v20 = vpop.f32.mrf.mxu0  ;;  %v224_v21 = vpop.f32.mrf.mxu1 }
  0xff   :  { %146 = vst [vmem:[#allocation7 + $0x8] sm:$0xff] %v221_v20  ;;  %148 = vst [vmem:[#allocation7 + $0x18] sm:$0xff] %v224_v21 }
 0x100   :  { %v126_v22 = vpop.f32.mrf.mxu0  ;;  %v136_v23 = vpop.f32.mrf.mxu1 }
 0x101   :  { %145 = vst [vmem:[#allocation7] sm:$0xff] %v126_v22  ;;  %147 = vst [vmem:[#allocation7 + $0x10] sm:$0xff] %v136_v23 }
 0x102   :  { %313 = shalt.err (!%p310_p0)
}
 0x103   :  { %160 = dma.vmem_to_hbm [thread:$0]  %s155_s1, 512, %s368_s2, [#allocation4], %s329_s12, %s329_s12, %s330_s13  }
 0x104   :  { %326 = dma.done.wait [#allocation4], 512  }
 0x105   :  { %327 = vsyncadd [#allocation4], 4294966784 }
 0x106   :  { %164 = vsyncpa [#allocation3], 1 }
 0x107   :  { %165 = vsyncpa [#allocation6], 1 }
 0x108   :  { %166 = vsyncpa [#allocation4], 1 }

</bundles_post_ra>
